<compile_context>
chip_gen: v5e
topology: v5e:2x2
jax: 0.10.0
libtpu: 0.0.40
codegen_flags: <defaults>
</compile_context>

<pallas_src>
import functools

import jax
import jax.numpy as jnp
from jax.experimental import pallas as pl
from jax.experimental.pallas import tpu as pltpu

NEG_SLOPE = 0.01  # nn.LeakyReLU default negative_slope


def _leaky_relu(x):
    return jnp.where(x >= 0, x, NEG_SLOPE * x)


def _round_up(x, m):
    return (x + m - 1) // m * m


# ----------------------------------------------------------------------------
# Fused kernel: conv1 -> LeakyReLU -> conv2 -> LeakyReLU -> spatial mean -> MLP
# One grid step == one batch element.
# ----------------------------------------------------------------------------
def _student_kernel(H, W,
                    x_ref, w1_ref, b1_ref, w2_ref, b2_ref,
                    fw1_ref, fb1_ref, fw2_ref, fb2_ref,
                    out1_ref, out2_ref, out3_ref, out4_ref):
    HW = H * W
    Cout = out1_ref.shape[0]

    # w-axis validity masks for the 3x3 stencil (hoisted; shared by both convs).
    lane = jax.lax.broadcasted_iota(jnp.int32, (1, HW), 1)
    w_pos = lane % W
    left_ok = w_pos >= 1           # position w-1 exists
    right_ok = w_pos <= W - 2      # position w+1 exists

    def shift_flat(a, off):
        # y[:, i] = a[:, i + off] if 0 <= i + off < HW else 0   (zero fill)
        if off == 0:
            return a
        c = a.shape[0]
        zeros = jnp.zeros((c, abs(off)), a.dtype)
        if off > 0:
            return jnp.concatenate([a[:, off:], zeros], axis=1)
        return jnp.concatenate([zeros, a[:, :HW + off]], axis=1)

    def im2col3x3(a):
        # a: (C, H*W) with C a multiple of 8  ->  (9*C, H*W).
        # Row block t = (dh+1)*3 + (dw+1) holds the (dh, dw)-shifted image
        # (zero outside the image), so a 3x3 "same" conv becomes one matmul.
        rows = []
        for dh in (-1, 0, 1):
            for dw in (-1, 0, 1):
                s = shift_flat(a, dh * W + dw)   # h-edges handled by zero fill
                if dw == -1:
                    s = jnp.where(left_ok, s, 0.0)
                elif dw == 1:
                    s = jnp.where(right_ok, s, 0.0)
                rows.append(s)
        return jnp.concatenate(rows, axis=0)

    def conv3x3_lrelu(a, w_ref_, b_ref_):
        patches = im2col3x3(a)                                    # (9*C, HW)
        y = jnp.dot(w_ref_[...], patches,
                    preferred_element_type=jnp.float32)           # (CoutP, HW)
        return _leaky_relu(y + b_ref_[...])                       # bias (CoutP, 1)

    a1 = conv3x3_lrelu(x_ref[...], w1_ref, b1_ref)                # (CoutP, HW)
    out1_ref[...] = a1[:Cout, :]
    a2 = conv3x3_lrelu(a1, w2_ref, b2_ref)                        # (CoutP, HW)
    out2_ref[...] = a2[:Cout, :]

    m = jnp.mean(a2[:Cout, :], axis=1, keepdims=True)             # (Cout, 1)
    out3_ref[...] = m

    # Classifier in column form: y = W @ x + b  (== PyTorch x @ W.T + b).
    h = _leaky_relu(jnp.dot(fw1_ref[...], m,
                            preferred_element_type=jnp.float32) + fb1_ref[...])
    out4_ref[...] = (jnp.dot(fw2_ref[...], h,
                             preferred_element_type=jnp.float32) + fb2_ref[...])


def student_forward_pallas(x_nchw, params):
    """Returns (out_1, out_2, out_3, out_4) with PyTorch layouts (NCHW / (B, C))."""
    B, Cin, H, W = x_nchw.shape
    Cout = params["conv1_w"].shape[0]
    NC = params["fc2_w"].shape[0]
    HW = H * W
    CinP = _round_up(Cin, 8)     # 8-sublane aligned tap blocks in the im2col
    CoutP = _round_up(Cout, 8)

    # Flat NCHW input, channel-padded to a multiple of 8 (tiny input; cheap).
    x_flat = x_nchw.reshape(B, Cin, HW).astype(jnp.float32)
    if CinP != Cin:
        x_flat = jnp.pad(x_flat, ((0, 0), (0, CinP - Cin), (0, 0)))

    def conv_w_mat(w, cin_p, cout_p):
        # (Cout, Cin, 3, 3) -> (cout_p, 9 * cin_p); columns ordered (tap, chan).
        co, ci = w.shape[0], w.shape[1]
        w = jnp.pad(w.astype(jnp.float32),
                    ((0, cout_p - co), (0, cin_p - ci), (0, 0), (0, 0)))
        return jnp.transpose(w, (0, 2, 3, 1)).reshape(cout_p, 9 * cin_p)

    w1 = conv_w_mat(params["conv1_w"], CinP, CoutP)
    w2 = conv_w_mat(params["conv2_w"], CoutP, CoutP)
    b1 = jnp.pad(params["conv1_b"].astype(jnp.float32),
                 (0, CoutP - Cout)).reshape(CoutP, 1)
    b2 = jnp.pad(params["conv2_b"].astype(jnp.float32),
                 (0, CoutP - Cout)).reshape(CoutP, 1)
    fw1 = params["fc1_w"].astype(jnp.float32)                 # (30, Cout)
    fb1 = params["fc1_b"].astype(jnp.float32).reshape(-1, 1)  # (30, 1)
    fw2 = params["fc2_w"].astype(jnp.float32)                 # (NC, 30)
    fb2 = params["fc2_b"].astype(jnp.float32).reshape(-1, 1)  # (NC, 1)

    def _full(arr):
        zeros = (0,) * arr.ndim
        return pl.BlockSpec(arr.shape, lambda b: zeros)

    out1f, out2f, out3c, out4c = pl.pallas_call(
        functools.partial(_student_kernel, H, W),
        grid=(B,),
        in_specs=[
            pl.BlockSpec((None, CinP, HW), lambda b: (b, 0, 0)),
            _full(w1), _full(b1), _full(w2), _full(b2),
            _full(fw1), _full(fb1), _full(fw2), _full(fb2),
        ],
        out_specs=(
            pl.BlockSpec((None, Cout, HW), lambda b: (b, 0, 0)),
            pl.BlockSpec((None, Cout, HW), lambda b: (b, 0, 0)),
            pl.BlockSpec((None, Cout, 1), lambda b: (b, 0, 0)),
            pl.BlockSpec((None, NC, 1), lambda b: (b, 0, 0)),
        ),
        out_shape=(
            jax.ShapeDtypeStruct((B, Cout, HW), jnp.float32),
            jax.ShapeDtypeStruct((B, Cout, HW), jnp.float32),
            jax.ShapeDtypeStruct((B, Cout, 1), jnp.float32),
            jax.ShapeDtypeStruct((B, NC, 1), jnp.float32),
        ),
        compiler_params=pltpu.CompilerParams(
            dimension_semantics=("parallel",)),
    )(x_flat, w1, b1, w2, b2, fw1, fb1, fw2, fb2)

    out1 = out1f.reshape(B, Cout, H, W)   # free reshapes back to PyTorch layout
    out2 = out2f.reshape(B, Cout, H, W)
    out3 = out3c.reshape(B, Cout)
    out4 = out4c.reshape(B, NC)
    return out1, out2, out3, out4


student_forward = jax.jit(student_forward_pallas)


def init_params(key, in_channels, out_channels, num_classes):
    """Deterministic parameter init (PyTorch shapes, small uniform values)."""
    ks = jax.random.split(key, 8)

    def u(k, shape, fan_in):
        bound = 1.0 / jnp.sqrt(fan_in)
        return jax.random.uniform(k, shape, jnp.float32, -bound, bound)

    return {
        "conv1_w": u(ks[0], (out_channels, in_channels, 3, 3), in_channels * 9),
        "conv1_b": u(ks[1], (out_channels,), in_channels * 9),
        "conv2_w": u(ks[2], (out_channels, out_channels, 3, 3), out_channels * 9),
        "conv2_b": u(ks[3], (out_channels,), out_channels * 9),
        "fc1_w": u(ks[4], (30, out_channels), out_channels),
        "fc1_b": u(ks[5], (30,), out_channels),
        "fc2_w": u(ks[6], (num_classes, 30), 30),
        "fc2_b": u(ks[7], (num_classes,), 30),
    }


def _reference(x_nchw, params):
    """Pure-JAX reference for a sanity check."""
    x = x_nchw.astype(jnp.float32)

    def conv(inp, w, b):
        y = jax.lax.conv_general_dilated(
            inp, w, window_strides=(1, 1), padding="SAME",
            dimension_numbers=("NCHW", "OIHW", "NCHW"))
        return _leaky_relu(y + b[None, :, None, None])

    o1 = conv(x, params["conv1_w"], params["conv1_b"])
    o2 = conv(o1, params["conv2_w"], params["conv2_b"])
    o3 = jnp.mean(o2, axis=(2, 3))
    h = _leaky_relu(o3 @ params["fc1_w"].T + params["fc1_b"])
    o4 = h @ params["fc2_w"].T + params["fc2_b"]
    return o1, o2, o3, o4


if __name__ == "__main__":
    B, Cin, Cout, H, W, num_classes = 2, 4, 8, 16, 16, 10

    key = jax.random.PRNGKey(0)
    kx, kp = jax.random.split(key)
    x = jax.random.normal(kx, (B, Cin, H, W), jnp.float32)
    params = init_params(kp, Cin, Cout, num_classes)

    outs = student_forward(x, params)
    outs = jax.block_until_ready(outs)

    refs = _reference(x, params)
    for o, r in zip(outs, refs):
        assert o.shape == r.shape and o.dtype == r.dtype
        assert float(jnp.max(jnp.abs(o - r))) < 2e-4, "mismatch vs reference"

    print("KERNEL_OK")
</pallas_src>

<mosaic_0001>
module attributes {stable_mosaic.version = 11 : i64} {
  func.func @_student_kernel(%arg0: i32, %arg1: memref<1x8x256xf32, #tpu.memory_space<vmem>>, %arg2: memref<8x72xf32, #tpu.memory_space<vmem>>, %arg3: memref<8x1xf32, #tpu.memory_space<vmem>>, %arg4: memref<8x72xf32, #tpu.memory_space<vmem>>, %arg5: memref<8x1xf32, #tpu.memory_space<vmem>>, %arg6: memref<30x8xf32, #tpu.memory_space<vmem>>, %arg7: memref<30x1xf32, #tpu.memory_space<vmem>>, %arg8: memref<10x30xf32, #tpu.memory_space<vmem>>, %arg9: memref<10x1xf32, #tpu.memory_space<vmem>>, %arg10: memref<1x8x256xf32, #tpu.memory_space<vmem>>, %arg11: memref<1x8x256xf32, #tpu.memory_space<vmem>>, %arg12: memref<1x8x1xf32, #tpu.memory_space<vmem>>, %arg13: memref<1x10x1xf32, #tpu.memory_space<vmem>>) attributes {dimension_semantics = [#tpu.dimension_semantics<parallel>], iteration_bounds = array<i64: 2>, scalar_prefetch = 0 : i64, scratch_operands = 0 : i64, tpu.core_type = #tpu.core_type<tc>, window_params = [{transform_indices = @transform_0, window_bounds = array<i64: 1, 8, 256>}, {pipeline_mode = #tpu.pipeline_mode<synchronous>, transform_indices = @transform_1, window_bounds = array<i64: 8, 72>}, {pipeline_mode = #tpu.pipeline_mode<synchronous>, transform_indices = @transform_2, window_bounds = array<i64: 8, 1>}, {pipeline_mode = #tpu.pipeline_mode<synchronous>, transform_indices = @transform_3, window_bounds = array<i64: 8, 72>}, {pipeline_mode = #tpu.pipeline_mode<synchronous>, transform_indices = @transform_4, window_bounds = array<i64: 8, 1>}, {pipeline_mode = #tpu.pipeline_mode<synchronous>, transform_indices = @transform_5, window_bounds = array<i64: 30, 8>}, {pipeline_mode = #tpu.pipeline_mode<synchronous>, transform_indices = @transform_6, window_bounds = array<i64: 30, 1>}, {pipeline_mode = #tpu.pipeline_mode<synchronous>, transform_indices = @transform_7, window_bounds = array<i64: 10, 30>}, {pipeline_mode = #tpu.pipeline_mode<synchronous>, transform_indices = @transform_8, window_bounds = array<i64: 10, 1>}, {transform_indices = @transform_9, window_bounds = array<i64: 1, 8, 256>}, {transform_indices = @transform_10, window_bounds = array<i64: 1, 8, 256>}, {transform_indices = @transform_11, window_bounds = array<i64: 1, 8, 1>}, {transform_indices = @transform_12, window_bounds = array<i64: 1, 10, 1>}]} {
    %0 = tpu.iota {dimensions = array<i32: 1>} : vector<1x256xi32>
    %c16_i32 = arith.constant 16 : i32
    %c0_i32 = arith.constant 0 : i32
    %1 = arith.cmpi eq, %c16_i32, %c0_i32 : i32
    %c1_i32 = arith.constant 1 : i32
    %2 = arith.select %1, %c1_i32, %c16_i32 : i32
    %3 = vector.broadcast %2 : i32 to vector<1x256xi32>
    %4 = arith.remsi %0, %3 : vector<1x256xi32>
    %c0_i32_0 = arith.constant 0 : i32
    %5 = vector.broadcast %c0_i32_0 : i32 to vector<1x256xi32>
    %6 = arith.cmpi ne, %4, %5 : vector<1x256xi32>
    %c0_i32_1 = arith.constant 0 : i32
    %7 = vector.broadcast %c0_i32_1 : i32 to vector<1x256xi32>
    %8 = arith.cmpi slt, %4, %7 : vector<1x256xi32>
    %c0_i32_2 = arith.constant 0 : i32
    %9 = arith.cmpi slt, %2, %c0_i32_2 : i32
    %10 = vector.broadcast %9 : i1 to vector<1x256xi1>
    %11 = vector.broadcast %10 : vector<1x256xi1> to vector<1x256xi1>
    %12 = arith.xori %8, %11 : vector<1x256xi1>
    %13 = arith.andi %12, %6 : vector<1x256xi1>
    %14 = vector.broadcast %2 : i32 to vector<1x256xi32>
    %15 = arith.addi %4, %14 : vector<1x256xi32>
    %16 = arith.select %13, %15, %4 : vector<1x256xi1>, vector<1x256xi32>
    %c1_i32_3 = arith.constant 1 : i32
    %17 = vector.broadcast %c1_i32_3 : i32 to vector<1x256xi32>
    %18 = arith.cmpi sge, %16, %17 : vector<1x256xi32>
    %c14_i32 = arith.constant 14 : i32
    %19 = vector.broadcast %c14_i32 : i32 to vector<1x256xi32>
    %20 = arith.cmpi sle, %16, %19 : vector<1x256xi32>
    %c0 = arith.constant 0 : index
    %c0_4 = arith.constant 0 : index
    %c0_5 = arith.constant 0 : index
    %21 = vector.load %arg1[%c0, %c0_4, %c0_5] : memref<1x8x256xf32, #tpu.memory_space<vmem>>, vector<1x8x256xf32>
    %22 = vector.shape_cast %21 : vector<1x8x256xf32> to vector<8x256xf32>
    %cst = arith.constant 0.000000e+00 : f32
    %23 = vector.broadcast %cst : f32 to vector<8x17xf32>
    %24 = vector.extract_strided_slice %22 {offsets = [0, 0], sizes = [8, 239], strides = [1, 1]} : vector<8x256xf32> to vector<8x239xf32>
    %25 = tpu.concatenate %23, %24 in 1 : vector<8x17xf32>, vector<8x239xf32> -> vector<8x256xf32>
    %cst_6 = arith.constant 0.000000e+00 : f32
    %26 = vector.shape_cast %18 : vector<1x256xi1> to vector<1x256xi1>
    %27 = vector.broadcast %26 : vector<1x256xi1> to vector<8x256xi1>
    %28 = vector.broadcast %cst_6 : f32 to vector<8x256xf32>
    %29 = arith.select %27, %25, %28 : vector<8x256xi1>, vector<8x256xf32>
    %cst_7 = arith.constant 0.000000e+00 : f32
    %30 = vector.broadcast %cst_7 : f32 to vector<8x16xf32>
    %31 = vector.extract_strided_slice %22 {offsets = [0, 0], sizes = [8, 240], strides = [1, 1]} : vector<8x256xf32> to vector<8x240xf32>
    %32 = tpu.concatenate %30, %31 in 1 : vector<8x16xf32>, vector<8x240xf32> -> vector<8x256xf32>
    %cst_8 = arith.constant 0.000000e+00 : f32
    %33 = vector.broadcast %cst_8 : f32 to vector<8x15xf32>
    %34 = vector.extract_strided_slice %22 {offsets = [0, 0], sizes = [8, 241], strides = [1, 1]} : vector<8x256xf32> to vector<8x241xf32>
    %35 = tpu.concatenate %33, %34 in 1 : vector<8x15xf32>, vector<8x241xf32> -> vector<8x256xf32>
    %cst_9 = arith.constant 0.000000e+00 : f32
    %36 = vector.shape_cast %20 : vector<1x256xi1> to vector<1x256xi1>
    %37 = vector.broadcast %36 : vector<1x256xi1> to vector<8x256xi1>
    %38 = vector.broadcast %cst_9 : f32 to vector<8x256xf32>
    %39 = arith.select %37, %35, %38 : vector<8x256xi1>, vector<8x256xf32>
    %cst_10 = arith.constant 0.000000e+00 : f32
    %40 = vector.broadcast %cst_10 : f32 to vector<8x1xf32>
    %41 = vector.extract_strided_slice %22 {offsets = [0, 0], sizes = [8, 255], strides = [1, 1]} : vector<8x256xf32> to vector<8x255xf32>
    %42 = tpu.concatenate %40, %41 in 1 : vector<8x1xf32>, vector<8x255xf32> -> vector<8x256xf32>
    %cst_11 = arith.constant 0.000000e+00 : f32
    %43 = vector.shape_cast %18 : vector<1x256xi1> to vector<1x256xi1>
    %44 = vector.broadcast %43 : vector<1x256xi1> to vector<8x256xi1>
    %45 = vector.broadcast %cst_11 : f32 to vector<8x256xf32>
    %46 = arith.select %44, %42, %45 : vector<8x256xi1>, vector<8x256xf32>
    %cst_12 = arith.constant 0.000000e+00 : f32
    %47 = vector.broadcast %cst_12 : f32 to vector<8x1xf32>
    %48 = vector.extract_strided_slice %22 {offsets = [0, 1], sizes = [8, 255], strides = [1, 1]} : vector<8x256xf32> to vector<8x255xf32>
    %49 = tpu.concatenate %48, %47 in 1 : vector<8x255xf32>, vector<8x1xf32> -> vector<8x256xf32>
    %cst_13 = arith.constant 0.000000e+00 : f32
    %50 = vector.shape_cast %20 : vector<1x256xi1> to vector<1x256xi1>
    %51 = vector.broadcast %50 : vector<1x256xi1> to vector<8x256xi1>
    %52 = vector.broadcast %cst_13 : f32 to vector<8x256xf32>
    %53 = arith.select %51, %49, %52 : vector<8x256xi1>, vector<8x256xf32>
    %cst_14 = arith.constant 0.000000e+00 : f32
    %54 = vector.broadcast %cst_14 : f32 to vector<8x15xf32>
    %55 = vector.extract_strided_slice %22 {offsets = [0, 15], sizes = [8, 241], strides = [1, 1]} : vector<8x256xf32> to vector<8x241xf32>
    %56 = tpu.concatenate %55, %54 in 1 : vector<8x241xf32>, vector<8x15xf32> -> vector<8x256xf32>
    %cst_15 = arith.constant 0.000000e+00 : f32
    %57 = vector.shape_cast %18 : vector<1x256xi1> to vector<1x256xi1>
    %58 = vector.broadcast %57 : vector<1x256xi1> to vector<8x256xi1>
    %59 = vector.broadcast %cst_15 : f32 to vector<8x256xf32>
    %60 = arith.select %58, %56, %59 : vector<8x256xi1>, vector<8x256xf32>
    %cst_16 = arith.constant 0.000000e+00 : f32
    %61 = vector.broadcast %cst_16 : f32 to vector<8x16xf32>
    %62 = vector.extract_strided_slice %22 {offsets = [0, 16], sizes = [8, 240], strides = [1, 1]} : vector<8x256xf32> to vector<8x240xf32>
    %63 = tpu.concatenate %62, %61 in 1 : vector<8x240xf32>, vector<8x16xf32> -> vector<8x256xf32>
    %cst_17 = arith.constant 0.000000e+00 : f32
    %64 = vector.broadcast %cst_17 : f32 to vector<8x17xf32>
    %65 = vector.extract_strided_slice %22 {offsets = [0, 17], sizes = [8, 239], strides = [1, 1]} : vector<8x256xf32> to vector<8x239xf32>
    %66 = tpu.concatenate %65, %64 in 1 : vector<8x239xf32>, vector<8x17xf32> -> vector<8x256xf32>
    %cst_18 = arith.constant 0.000000e+00 : f32
    %67 = vector.shape_cast %20 : vector<1x256xi1> to vector<1x256xi1>
    %68 = vector.broadcast %67 : vector<1x256xi1> to vector<8x256xi1>
    %69 = vector.broadcast %cst_18 : f32 to vector<8x256xf32>
    %70 = arith.select %68, %66, %69 : vector<8x256xi1>, vector<8x256xf32>
    %71 = tpu.concatenate %29, %32, %39, %46, %22, %53, %60, %63, %70 in 0 : vector<8x256xf32>, vector<8x256xf32>, vector<8x256xf32>, vector<8x256xf32>, vector<8x256xf32>, vector<8x256xf32>, vector<8x256xf32>, vector<8x256xf32>, vector<8x256xf32> -> vector<72x256xf32>
    %c0_19 = arith.constant 0 : index
    %c0_20 = arith.constant 0 : index
    %72 = vector.load %arg2[%c0_19, %c0_20] : memref<8x72xf32, #tpu.memory_space<vmem>>, vector<8x72xf32>
    %cst_21 = arith.constant dense<0.000000e+00> : vector<8x256xf32>
    %73 = tpu.matmul %72, %71, %cst_21 {dimension_numbers = #tpu.dot_dimension_numbers<[1], [0], [0], [1], [0, 0, 1, 1], [], []>} : vector<8x72xf32>, vector<72x256xf32>, vector<8x256xf32> -> vector<8x256xf32>
    %c0_22 = arith.constant 0 : index
    %c0_23 = arith.constant 0 : index
    %74 = vector.load %arg3[%c0_22, %c0_23] : memref<8x1xf32, #tpu.memory_space<vmem>>, vector<8x1xf32>
    %75 = vector.broadcast %74 : vector<8x1xf32> to vector<8x256xf32>
    %76 = arith.addf %73, %75 : vector<8x256xf32>
    %cst_24 = arith.constant 0.000000e+00 : f32
    %77 = vector.broadcast %cst_24 : f32 to vector<8x256xf32>
    %78 = arith.cmpf oge, %76, %77 : vector<8x256xf32>
    %cst_25 = arith.constant 0.00999999977 : f32
    %79 = vector.broadcast %cst_25 : f32 to vector<8x256xf32>
    %80 = arith.mulf %79, %76 : vector<8x256xf32>
    %81 = arith.select %78, %76, %80 : vector<8x256xi1>, vector<8x256xf32>
    %c0_26 = arith.constant 0 : index
    %c0_27 = arith.constant 0 : index
    %c0_28 = arith.constant 0 : index
    %82 = vector.load %arg10[%c0_26, %c0_27, %c0_28] : memref<1x8x256xf32, #tpu.memory_space<vmem>>, vector<1x8x256xf32>
    %83 = vector.shape_cast %82 : vector<1x8x256xf32> to vector<8x256xf32>
    %84 = vector.shape_cast %81 : vector<8x256xf32> to vector<1x8x256xf32>
    tpu.vector_store %arg10[%c0_26, %c0_27, %c0_28], %84 {strides = array<i32>} : memref<1x8x256xf32, #tpu.memory_space<vmem>>, vector<1x8x256xf32>,
    %cst_29 = arith.constant 0.000000e+00 : f32
    %85 = vector.broadcast %cst_29 : f32 to vector<8x17xf32>
    %86 = vector.extract_strided_slice %81 {offsets = [0, 0], sizes = [8, 239], strides = [1, 1]} : vector<8x256xf32> to vector<8x239xf32>
    %87 = tpu.concatenate %85, %86 in 1 : vector<8x17xf32>, vector<8x239xf32> -> vector<8x256xf32>
    %cst_30 = arith.constant 0.000000e+00 : f32
    %88 = vector.shape_cast %18 : vector<1x256xi1> to vector<1x256xi1>
    %89 = vector.broadcast %88 : vector<1x256xi1> to vector<8x256xi1>
    %90 = vector.broadcast %cst_30 : f32 to vector<8x256xf32>
    %91 = arith.select %89, %87, %90 : vector<8x256xi1>, vector<8x256xf32>
    %cst_31 = arith.constant 0.000000e+00 : f32
    %92 = vector.broadcast %cst_31 : f32 to vector<8x16xf32>
    %93 = vector.extract_strided_slice %81 {offsets = [0, 0], sizes = [8, 240], strides = [1, 1]} : vector<8x256xf32> to vector<8x240xf32>
    %94 = tpu.concatenate %92, %93 in 1 : vector<8x16xf32>, vector<8x240xf32> -> vector<8x256xf32>
    %cst_32 = arith.constant 0.000000e+00 : f32
    %95 = vector.broadcast %cst_32 : f32 to vector<8x15xf32>
    %96 = vector.extract_strided_slice %81 {offsets = [0, 0], sizes = [8, 241], strides = [1, 1]} : vector<8x256xf32> to vector<8x241xf32>
    %97 = tpu.concatenate %95, %96 in 1 : vector<8x15xf32>, vector<8x241xf32> -> vector<8x256xf32>
    %cst_33 = arith.constant 0.000000e+00 : f32
    %98 = vector.shape_cast %20 : vector<1x256xi1> to vector<1x256xi1>
    %99 = vector.broadcast %98 : vector<1x256xi1> to vector<8x256xi1>
    %100 = vector.broadcast %cst_33 : f32 to vector<8x256xf32>
    %101 = arith.select %99, %97, %100 : vector<8x256xi1>, vector<8x256xf32>
    %cst_34 = arith.constant 0.000000e+00 : f32
    %102 = vector.broadcast %cst_34 : f32 to vector<8x1xf32>
    %103 = vector.extract_strided_slice %81 {offsets = [0, 0], sizes = [8, 255], strides = [1, 1]} : vector<8x256xf32> to vector<8x255xf32>
    %104 = tpu.concatenate %102, %103 in 1 : vector<8x1xf32>, vector<8x255xf32> -> vector<8x256xf32>
    %cst_35 = arith.constant 0.000000e+00 : f32
    %105 = vector.shape_cast %18 : vector<1x256xi1> to vector<1x256xi1>
    %106 = vector.broadcast %105 : vector<1x256xi1> to vector<8x256xi1>
    %107 = vector.broadcast %cst_35 : f32 to vector<8x256xf32>
    %108 = arith.select %106, %104, %107 : vector<8x256xi1>, vector<8x256xf32>
    %cst_36 = arith.constant 0.000000e+00 : f32
    %109 = vector.broadcast %cst_36 : f32 to vector<8x1xf32>
    %110 = vector.extract_strided_slice %81 {offsets = [0, 1], sizes = [8, 255], strides = [1, 1]} : vector<8x256xf32> to vector<8x255xf32>
    %111 = tpu.concatenate %110, %109 in 1 : vector<8x255xf32>, vector<8x1xf32> -> vector<8x256xf32>
    %cst_37 = arith.constant 0.000000e+00 : f32
    %112 = vector.shape_cast %20 : vector<1x256xi1> to vector<1x256xi1>
    %113 = vector.broadcast %112 : vector<1x256xi1> to vector<8x256xi1>
    %114 = vector.broadcast %cst_37 : f32 to vector<8x256xf32>
    %115 = arith.select %113, %111, %114 : vector<8x256xi1>, vector<8x256xf32>
    %cst_38 = arith.constant 0.000000e+00 : f32
    %116 = vector.broadcast %cst_38 : f32 to vector<8x15xf32>
    %117 = vector.extract_strided_slice %81 {offsets = [0, 15], sizes = [8, 241], strides = [1, 1]} : vector<8x256xf32> to vector<8x241xf32>
    %118 = tpu.concatenate %117, %116 in 1 : vector<8x241xf32>, vector<8x15xf32> -> vector<8x256xf32>
    %cst_39 = arith.constant 0.000000e+00 : f32
    %119 = vector.shape_cast %18 : vector<1x256xi1> to vector<1x256xi1>
    %120 = vector.broadcast %119 : vector<1x256xi1> to vector<8x256xi1>
    %121 = vector.broadcast %cst_39 : f32 to vector<8x256xf32>
    %122 = arith.select %120, %118, %121 : vector<8x256xi1>, vector<8x256xf32>
    %cst_40 = arith.constant 0.000000e+00 : f32
    %123 = vector.broadcast %cst_40 : f32 to vector<8x16xf32>
    %124 = vector.extract_strided_slice %81 {offsets = [0, 16], sizes = [8, 240], strides = [1, 1]} : vector<8x256xf32> to vector<8x240xf32>
    %125 = tpu.concatenate %124, %123 in 1 : vector<8x240xf32>, vector<8x16xf32> -> vector<8x256xf32>
    %cst_41 = arith.constant 0.000000e+00 : f32
    %126 = vector.broadcast %cst_41 : f32 to vector<8x17xf32>
    %127 = vector.extract_strided_slice %81 {offsets = [0, 17], sizes = [8, 239], strides = [1, 1]} : vector<8x256xf32> to vector<8x239xf32>
    %128 = tpu.concatenate %127, %126 in 1 : vector<8x239xf32>, vector<8x17xf32> -> vector<8x256xf32>
    %cst_42 = arith.constant 0.000000e+00 : f32
    %129 = vector.shape_cast %20 : vector<1x256xi1> to vector<1x256xi1>
    %130 = vector.broadcast %129 : vector<1x256xi1> to vector<8x256xi1>
    %131 = vector.broadcast %cst_42 : f32 to vector<8x256xf32>
    %132 = arith.select %130, %128, %131 : vector<8x256xi1>, vector<8x256xf32>
    %133 = tpu.concatenate %91, %94, %101, %108, %81, %115, %122, %125, %132 in 0 : vector<8x256xf32>, vector<8x256xf32>, vector<8x256xf32>, vector<8x256xf32>, vector<8x256xf32>, vector<8x256xf32>, vector<8x256xf32>, vector<8x256xf32>, vector<8x256xf32> -> vector<72x256xf32>
    %c0_43 = arith.constant 0 : index
    %c0_44 = arith.constant 0 : index
    %134 = vector.load %arg4[%c0_43, %c0_44] : memref<8x72xf32, #tpu.memory_space<vmem>>, vector<8x72xf32>
    %cst_45 = arith.constant dense<0.000000e+00> : vector<8x256xf32>
    %135 = tpu.matmul %134, %133, %cst_45 {dimension_numbers = #tpu.dot_dimension_numbers<[1], [0], [0], [1], [0, 0, 1, 1], [], []>} : vector<8x72xf32>, vector<72x256xf32>, vector<8x256xf32> -> vector<8x256xf32>
    %c0_46 = arith.constant 0 : index
    %c0_47 = arith.constant 0 : index
    %136 = vector.load %arg5[%c0_46, %c0_47] : memref<8x1xf32, #tpu.memory_space<vmem>>, vector<8x1xf32>
    %137 = vector.broadcast %136 : vector<8x1xf32> to vector<8x256xf32>
    %138 = arith.addf %135, %137 : vector<8x256xf32>
    %cst_48 = arith.constant 0.000000e+00 : f32
    %139 = vector.broadcast %cst_48 : f32 to vector<8x256xf32>
    %140 = arith.cmpf oge, %138, %139 : vector<8x256xf32>
    %cst_49 = arith.constant 0.00999999977 : f32
    %141 = vector.broadcast %cst_49 : f32 to vector<8x256xf32>
    %142 = arith.mulf %141, %138 : vector<8x256xf32>
    %143 = arith.select %140, %138, %142 : vector<8x256xi1>, vector<8x256xf32>
    %c0_50 = arith.constant 0 : index
    %c0_51 = arith.constant 0 : index
    %c0_52 = arith.constant 0 : index
    %144 = vector.load %arg11[%c0_50, %c0_51, %c0_52] : memref<1x8x256xf32, #tpu.memory_space<vmem>>, vector<1x8x256xf32>
    %145 = vector.shape_cast %144 : vector<1x8x256xf32> to vector<8x256xf32>
    %146 = vector.shape_cast %143 : vector<8x256xf32> to vector<1x8x256xf32>
    tpu.vector_store %arg11[%c0_50, %c0_51, %c0_52], %146 {strides = array<i32>} : memref<1x8x256xf32, #tpu.memory_space<vmem>>, vector<1x8x256xf32>,
    %cst_53 = arith.constant dense<0.000000e+00> : vector<8xf32>
    %147 = vector.multi_reduction <add>, %143, %cst_53 [1] : vector<8x256xf32> to vector<8xf32>
    %148 = vector.shape_cast %147 : vector<8xf32> to vector<8x1xf32>
    %cst_54 = arith.constant 2.560000e+02 : f32
    %149 = vector.broadcast %cst_54 : f32 to vector<8x1xf32>
    %150 = arith.divf %148, %149 : vector<8x1xf32>
    %c0_55 = arith.constant 0 : index
    %c0_56 = arith.constant 0 : index
    %c0_57 = arith.constant 0 : index
    %151 = vector.load %arg12[%c0_55, %c0_56, %c0_57] : memref<1x8x1xf32, #tpu.memory_space<vmem>>, vector<1x8x1xf32>
    %152 = vector.shape_cast %151 : vector<1x8x1xf32> to vector<8x1xf32>
    %153 = vector.shape_cast %150 : vector<8x1xf32> to vector<1x8x1xf32>
    tpu.vector_store %arg12[%c0_55, %c0_56, %c0_57], %153 {strides = array<i32>} : memref<1x8x1xf32, #tpu.memory_space<vmem>>, vector<1x8x1xf32>,
    %c0_58 = arith.constant 0 : index
    %c0_59 = arith.constant 0 : index
    %154 = vector.load %arg6[%c0_58, %c0_59] : memref<30x8xf32, #tpu.memory_space<vmem>>, vector<30x8xf32>
    %cst_60 = arith.constant dense<0.000000e+00> : vector<30x1xf32>
    %155 = tpu.matmul %154, %150, %cst_60 {dimension_numbers = #tpu.dot_dimension_numbers<[1], [0], [0], [1], [0, 0, 1, 1], [], []>} : vector<30x8xf32>, vector<8x1xf32>, vector<30x1xf32> -> vector<30x1xf32>
    %c0_61 = arith.constant 0 : index
    %c0_62 = arith.constant 0 : index
    %156 = vector.load %arg7[%c0_61, %c0_62] : memref<30x1xf32, #tpu.memory_space<vmem>>, vector<30x1xf32>
    %157 = arith.addf %155, %156 : vector<30x1xf32>
    %cst_63 = arith.constant 0.000000e+00 : f32
    %158 = vector.broadcast %cst_63 : f32 to vector<30x1xf32>
    %159 = arith.cmpf oge, %157, %158 : vector<30x1xf32>
    %cst_64 = arith.constant 0.00999999977 : f32
    %160 = vector.broadcast %cst_64 : f32 to vector<30x1xf32>
    %161 = arith.mulf %160, %157 : vector<30x1xf32>
    %162 = arith.select %159, %157, %161 : vector<30x1xi1>, vector<30x1xf32>
    %c0_65 = arith.constant 0 : index
    %c0_66 = arith.constant 0 : index
    %163 = vector.load %arg8[%c0_65, %c0_66] : memref<10x30xf32, #tpu.memory_space<vmem>>, vector<10x30xf32>
    %cst_67 = arith.constant dense<0.000000e+00> : vector<10x1xf32>
    %164 = tpu.matmul %163, %162, %cst_67 {dimension_numbers = #tpu.dot_dimension_numbers<[1], [0], [0], [1], [0, 0, 1, 1], [], []>} : vector<10x30xf32>, vector<30x1xf32>, vector<10x1xf32> -> vector<10x1xf32>
    %c0_68 = arith.constant 0 : index
    %c0_69 = arith.constant 0 : index
    %165 = vector.load %arg9[%c0_68, %c0_69] : memref<10x1xf32, #tpu.memory_space<vmem>>, vector<10x1xf32>
    %166 = arith.addf %164, %165 : vector<10x1xf32>
    %c0_70 = arith.constant 0 : index
    %c0_71 = arith.constant 0 : index
    %c0_72 = arith.constant 0 : index
    %167 = vector.load %arg13[%c0_70, %c0_71, %c0_72] : memref<1x10x1xf32, #tpu.memory_space<vmem>>, vector<1x10x1xf32>
    %168 = vector.shape_cast %167 : vector<1x10x1xf32> to vector<10x1xf32>
    %169 = vector.shape_cast %166 : vector<10x1xf32> to vector<1x10x1xf32>
    tpu.vector_store %arg13[%c0_70, %c0_71, %c0_72], %169 {strides = array<i32>} : memref<1x10x1xf32, #tpu.memory_space<vmem>>, vector<1x10x1xf32>,
    return
  }
  func.func @transform_0(%arg0: i32) -> (i32, i32, i32) {
    %c0_i32 = arith.constant 0 : i32
    %c0_i32_0 = arith.constant 0 : i32
    %c0_i32_1 = arith.constant 0 : i32
    return %arg0, %c0_i32, %c0_i32_0 : i32, i32, i32
  }
  func.func @transform_1(%arg0: i32) -> (i32, i32) {
    %c0_i32 = arith.constant 0 : i32
    %c0_i32_0 = arith.constant 0 : i32
    %c0_i32_1 = arith.constant 0 : i32
    return %c0_i32, %c0_i32_0 : i32, i32
  }
  func.func @transform_2(%arg0: i32) -> (i32, i32) {
    %c0_i32 = arith.constant 0 : i32
    %c0_i32_0 = arith.constant 0 : i32
    %c0_i32_1 = arith.constant 0 : i32
    return %c0_i32, %c0_i32_0 : i32, i32
  }
  func.func @transform_3(%arg0: i32) -> (i32, i32) {
    %c0_i32 = arith.constant 0 : i32
    %c0_i32_0 = arith.constant 0 : i32
    %c0_i32_1 = arith.constant 0 : i32
    return %c0_i32, %c0_i32_0 : i32, i32
  }
  func.func @transform_4(%arg0: i32) -> (i32, i32) {
    %c0_i32 = arith.constant 0 : i32
    %c0_i32_0 = arith.constant 0 : i32
    %c0_i32_1 = arith.constant 0 : i32
    return %c0_i32, %c0_i32_0 : i32, i32
  }
  func.func @transform_5(%arg0: i32) -> (i32, i32) {
    %c0_i32 = arith.constant 0 : i32
    %c0_i32_0 = arith.constant 0 : i32
    %c0_i32_1 = arith.constant 0 : i32
    return %c0_i32, %c0_i32_0 : i32, i32
  }
  func.func @transform_6(%arg0: i32) -> (i32, i32) {
    %c0_i32 = arith.constant 0 : i32
    %c0_i32_0 = arith.constant 0 : i32
    %c0_i32_1 = arith.constant 0 : i32
    return %c0_i32, %c0_i32_0 : i32, i32
  }
  func.func @transform_7(%arg0: i32) -> (i32, i32) {
    %c0_i32 = arith.constant 0 : i32
    %c0_i32_0 = arith.constant 0 : i32
    %c0_i32_1 = arith.constant 0 : i32
    return %c0_i32, %c0_i32_0 : i32, i32
  }
  func.func @transform_8(%arg0: i32) -> (i32, i32) {
    %c0_i32 = arith.constant 0 : i32
    %c0_i32_0 = arith.constant 0 : i32
    %c0_i32_1 = arith.constant 0 : i32
    return %c0_i32, %c0_i32_0 : i32, i32
  }
  func.func @transform_9(%arg0: i32) -> (i32, i32, i32) {
    %c0_i32 = arith.constant 0 : i32
    %c0_i32_0 = arith.constant 0 : i32
    %c0_i32_1 = arith.constant 0 : i32
    return %arg0, %c0_i32, %c0_i32_0 : i32, i32, i32
  }
  func.func @transform_10(%arg0: i32) -> (i32, i32, i32) {
    %c0_i32 = arith.constant 0 : i32
    %c0_i32_0 = arith.constant 0 : i32
    %c0_i32_1 = arith.constant 0 : i32
    return %arg0, %c0_i32, %c0_i32_0 : i32, i32, i32
  }
  func.func @transform_11(%arg0: i32) -> (i32, i32, i32) {
    %c0_i32 = arith.constant 0 : i32
    %c0_i32_0 = arith.constant 0 : i32
    %c0_i32_1 = arith.constant 0 : i32
    return %arg0, %c0_i32, %c0_i32_0 : i32, i32, i32
  }
  func.func @transform_12(%arg0: i32) -> (i32, i32, i32) {
    %c0_i32 = arith.constant 0 : i32
    %c0_i32_0 = arith.constant 0 : i32
    %c0_i32_1 = arith.constant 0 : i32
    return %arg0, %c0_i32, %c0_i32_0 : i32, i32, i32
  }
}

</mosaic_0001>

<bundles_post_ra>
// kernel: student_forward_pallas.1
= control target key start
LH: loop header
LB: loop body
LE: loop exit
PB: predicated region body
PF: predicated region fallthrough
CT: control target
= control target key end

     0   :  { %s1206_s21 = smov 0   ;;  %s1453_s0 = inlined_call_operand.vmem [shape: f32[2,8,256], index: 0, kind: input, shape index: {}]   ;;  %s1454_s1 = inlined_call_operand.vmem [shape: f32[8,72], index: 1, kind: input, shape index: {}]   ;;  %s1455_s2 = inlined_call_operand.vmem [shape: f32[8,1], index: 2, kind: input, shape index: {}]   ;;  %s1456_s3 = inlined_call_operand.vmem [shape: f32[8,72], index: 3, kind: input, shape index: {}]   ;;  %s1457_s4 = inlined_call_operand.vmem [shape: f32[8,1], index: 4, kind: input, shape index: {}]   ;;  %s1458_s5 = inlined_call_operand.vmem [shape: f32[30,8], index: 5, kind: input, shape index: {}]   ;;  %s1459_s6 = inlined_call_operand.vmem [shape: f32[30,1], index: 6, kind: input, shape index: {}]   ;;  %s1460_s7 = inlined_call_operand.vmem [shape: f32[10,30], index: 7, kind: input, shape index: {}]   ;;  %s1461_s8 = inlined_call_operand.vmem [shape: f32[10,1], index: 8, kind: input, shape index: {}]   ;;  %s1462_s9 = inlined_call_operand.vmem [shape: f32[2,8,256], index: 9, kind: output, shape index: {0}]   ;;  %s1463_s10 = inlined_call_operand.vmem [shape: f32[2,8,256], index: 10, kind: output, shape index: {1}]   ;;  %s1464_s11 = inlined_call_operand.vmem [shape: f32[2,8,1], index: 11, kind: output, shape index: {2}]   ;;  %s1465_s12 = inlined_call_operand.vmem [shape: f32[2,10,1], index: 12, kind: output, shape index: {3}]  }
   0x1 LB: > { %s1038_s22 = sadd.s32 4294967295, %s1129_s21   ;;  %p1042_p0 = scmp.ge.s32.totalorder %s1129_s21, 1  ;;  %s1129_s21 = sphi %s1206_s21, %s23_s21  }
   0x2   : > { %p369_p1 = scmp.lt.s32.totalorder %s1129_s21, 3 }
   0x4   : > { %p370_p2 = pnand %p1042_p0, %p369_p1 }
   0x5   : > { %p425_p3 = scmp.lt.s32.totalorder (!%p370_p2), %s1038_s22, 1  ;;  %s1131_s27 = smov (!%p370_p2), 112  }
   0x6   : > { %373 = sbr.rel (%p370_p2) target bundleno = 999 (0x3e7), region = 56  ;;  %s1132_s28 = smov (!%p370_p2), 111  }
   0x7   : > { %s1133_s29 = smov (!%p370_p2), 113   ;;  %s1134_s30 = smov (!%p370_p2), 127  }
   0x8   : > { %s1135_s13 = smov (!%p370_p2), 1   ;;  %s1136_s14 = smov (!%p370_p2), 15  }
   0x9   : > { %s1137_s15 = smov (!%p370_p2), 16   ;;  %s1138_s16 = smov (!%p370_p2), 17  }
   0xb   : > { %s1477_s22 = smov (!%p425_p3, %s1038_s22), 1  ;;  %v449_v3 = vlaneseq  ;;  %vm569_vm0 = vcmask 908288   ;;  %vm560_vm3 = vcmask 916480   ;;  %vm549_vm5 = vcmask 924672   ;;  %v577_v22 = vld [vmem:[%s1455_s2] sm:$0xff] }
   0xc   : > { %s1217_s23 = sshll.u32 %s1477_s22, 4  ;;  %v1139_v24 = vmov 0   ;;  %vm538_vm7 = vcmask 1039360   ;;  %vm527_vm8 = vcmask 7168   ;;  %vm512_vm9 = vcmask 121856   ;;  %v576_v42 = vld [vmem:[%s1454_s1] sm:$0xff] }
   0xd   : > { %s429_s26 = scalar_lea.vmem %s1453_s0, %s1217_s23  ;;  %v450_v4 = vand.u32 127, %v449_v3  ;;  %1119 = vset.pattern.permute.xlu1 %v1139_v24  ;;  %1120 = vset.pattern.permute.xlu0 %v1139_v24  ;;  %vm503_vm10 = vcmask 130048   ;;  %vm488_vm11 = vcmask 138240   ;;  %vm583_vm13 = vcmask 588800  }
   0xe   : > { %v1223_v0 = vld [vmem:[%s429_s26] sm:$0xff]  ;;  %v1231_v1 = vld [vmem:[%s429_s26 + $0x8] sm:$0xff]  ;;  %vm1313_vm12 = vmneg %vm503_vm10  ;;  %s434_s26 = scalar_lea.vmem %s1462_s9, %s1217_s23 }
   0xf   : > { %556 = vrot.lane.b32.xlu1 %v1223_v0, %s1131_s27  ;;  %565 = vrot.lane.b32.xlu0 %v1223_v0, %s1132_s28  ;;  %v451_v6 = vadd.s32 128, %v450_v4  ;;  %v456_v9 = vand.u32 15, %v450_v4 }
  0x10   : > { %545 = vrot.lane.b32.xlu2 %v1223_v0, %s1133_s29 }
  0x11   : > { %v463_v10 = vand.u32 15, %v451_v6  ;;  %vm1259_vm1 = vcmp.le.s32.totalorder %v456_v9, 14  ;;  %vm1273_vm4 = vcmp.ge.s32.totalorder %v456_v9, 1 }
  0x13   : > { %vm1263_vm2 = vcmp.le.s32.totalorder %v463_v10, 14  ;;  %vm1278_vm6 = vcmp.ge.s32.totalorder %v463_v10, 1 }
  0x17   : > { %558 = vrot.lane.b32.xlu1 %v1231_v1, %s1131_s27  ;;  %567 = vrot.lane.b32.xlu0 %v1231_v1, %s1132_s28 }
  0x18   : > { %547 = vrot.lane.b32.xlu2 %v1231_v1, %s1133_s29 }
  0x1f   : > { %536 = vrot.lane.b32.xlu1 %v1231_v1, %s1134_s30  ;;  %534 = vrot.lane.b32.xlu0 %v1223_v0, %s1134_s30 }
  0x20   : > { %523 = vrot.lane.b32.xlu2 %v1223_v0, %s1135_s13 }
  0x27   : > { %508 = vrot.lane.b32.xlu1 %v1223_v0, %s1136_s14  ;;  %525 = vrot.lane.b32.xlu0 %v1231_v1, %s1135_s13 }
  0x28   : > { %510 = vrot.lane.b32.xlu2 %v1231_v1, %s1136_s14 }
  0x2f   : > { %501 = vrot.lane.b32.xlu1 %v1231_v1, %s1137_s15  ;;  %499 = vrot.lane.b32.xlu0 %v1223_v0, %s1137_s15 }
  0x30   : > { %484 = vrot.lane.b32.xlu2 %v1223_v0, %s1138_s16 }
  0x37   : > { %486 = vrot.lane.b32.xlu0 %v1231_v1, %s1138_s16  ;;  %580 = vperm.xlu1 %1119, %v577_v22  }
  0x6a   : > { %v546_v2 = vpop.permute.xlu2 %545 }
  0x72   : > { %v548_v5 = vpop.permute.xlu2 %547 }
  0x73   : > { %v553_v21 = vsel %vm549_vm5, %v548_v5, 0.0  ;;  %v550_v23 = vsel %vm549_vm5, %v546_v2, %v548_v5 }
  0x7a   : > { %v524_v17 = vpop.permute.xlu2 %523 }
  0x7b   : > { %v531_v30 = vsel %vm527_vm8, 0.0, %v524_v17 }
  0x81   : > { %v557_v7 = vpop.permute.xlu1 %556  ;;  %v566_v8 = vpop.permute.xlu0 %565 }
  0x82   : > { %v511_v29 = vpop.permute.xlu2 %510 }
  0x89   : > { %v559_v13 = vpop.permute.xlu1 %558  ;;  %v568_v14 = vpop.permute.xlu0 %567 }
  0x8a   : > { %v570_v15 = vsel %vm569_vm0, %v566_v8, %v568_v14  ;;  %v573_v16 = vsel %vm569_vm0, %v568_v14, 0.0  ;;  %v561_v19 = vsel %vm560_vm3, %v557_v7, %v559_v13  ;;  %v485_v36 = vpop.permute.xlu2 %484 }
  0x8b   : > { %1052 = vmatpush.msk.msra.mxu0 %vm1259_vm1, %v570_v15  ;;  %1061 = vmatpush.msk.msra.mxu1 %vm1263_vm2, %v573_v16  ;;  %v492_v40 = vsel %vm488_vm11, 0.0, %v485_v36 }
  0x8d   : > { %595 = vmatpush.msra.mxu0 %v561_v19  ;;  %1062 = vmatpush.msk.msra.mxu1 %vm560_vm3, %v559_v13  ;;  %v713_v19 = vld [vmem:[%s1456_s3] sm:$0xff] }
  0x8f   : > { %1053 = vmatpush.msk.msra.mxu0 %vm1273_vm4, %v550_v23  ;;  %1063 = vmatpush.msk.msra.mxu1 %vm1278_vm6, %v553_v21 }
  0x91   : > { %v537_v25 = vpop.permute.xlu1 %536  ;;  %v535_v26 = vpop.permute.xlu0 %534 }
  0x92   : > { %v539_v27 = vsel %vm538_vm7, %v535_v26, %v537_v25  ;;  %v542_v28 = vsel %vm538_vm7, %v537_v25, 0.0 }
  0x93   : > { %1054 = vmatpush.msk.msra.mxu0 %vm1259_vm1, %v539_v27  ;;  %1064 = vmatpush.msk.msra.mxu1 %vm1263_vm2, %v542_v28 }
  0x95   : > { %598 = vmatpush.msra.mxu0 %v1223_v0  ;;  %618 = vmatpush.msra.mxu1 %v1231_v1  ;;  %v714_v0 = vld [vmem:[%s1457_s4] sm:$0xff] }
  0x97   : > { %1055 = vmatpush.msk.msra.mxu0 %vm1273_vm4, %v531_v30 }
  0x99   : > { %v509_v31 = vpop.permute.xlu1 %508  ;;  %v526_v32 = vpop.permute.xlu0 %525 }
  0x9a   : > { %v528_v33 = vsel %vm527_vm8, %v524_v17, %v526_v32  ;;  %v516_v34 = vsel %vm512_vm9, 0.0, %v509_v31  ;;  %v513_v35 = vsel %vm512_vm9, %v509_v31, %v511_v29  ;;  %v1140_v32 = vmov 256.0  }
  0x9b   : > { %1065 = vmatpush.msk.msra.mxu1 %vm1278_vm6, %v528_v33  ;;  %1056 = vmatpush.msk.msra.mxu0 %vm1259_vm1, %v516_v34  ;;  %1121 = vrcp.f32 %v1140_v32 }
  0x9d   : > { %1066 = vmatpush.msk.msra.mxu1 %vm1263_vm2, %v513_v35 }
  0xa1   : > { %v502_v38 = vpop.permute.xlu1 %501  ;;  %v500_v39 = vpop.permute.xlu0 %499 }
  0xa2   : > { %1058 = vmatpush.msk.msra.mxu0 %vm1313_vm12, %v500_v39  ;;  %v504_v41 = vsel %vm503_vm10, %v500_v39, %v502_v38  ;;  %v1122_v33 = vpop.eup %1121 }
  0xa3   : > { %621 = vmatpush.msra.mxu1 %v504_v41  ;;  %v775_v34 = vmul.f32 256.0, %v1122_v33  ;;  %v784_v41 = vld [vmem:[%s1458_s5 + $0x8] sm:$0xff] }
  0xa4   : > { %1059 = vmatpush.msk.msra.mxu0 %vm1273_vm4, %v492_v40 }
  0xa5   : > { %1060 = vmatmul.msk.f32.vlgmr.msra.gmra.mxu0 %vm583_vm13, %v576_v42  ;;  %v776_v35 = vsub.f32 1.0, %v775_v34 }
  0xa9   : > { %v487_v43 = vpop.permute.xlu0 %486  ;;  %v581_v45 = vpop.permute.xlu1 %580 }
  0xaa   : > { %v489_v44 = vsel %vm488_vm11, %v485_v36, %v487_v43  ;;  %v777_v36 = vmul.f32 %v1122_v33, %v776_v35  ;;  %v783_v43 = vld [vmem:[%s1458_s5] sm:$0xff] }
  0xab   : > { %1067 = vmatpush.msk.msra.mxu1 %vm1278_vm6, %v489_v44  ;;  %v785_v44 = vld [vmem:[%s1458_s5 + $0x10] sm:$0xff] }
  0xac   : > { %1068 = vmatmul.msk.f32.vlgmr.msra.gmra.mxu1 %vm583_vm13, %v576_v42  ;;  %v778_v37 = vadd.f32 %v1122_v33, %v777_v36  ;;  %v786_v42 = vld [vmem:[%s1458_s5 + $0x18] sm:$0x3f] }
 0x122   : > { %v604_v46 = vpop.f32.mrf.mxu0 }
 0x123   : > { %v605_v47 = vadd.f32 %v604_v46, %v581_v45 }
 0x125   : > { %vm627_vm14 = vcmp.ge.f32.partialorder %v605_v47, 0.0  ;;  %v629_v48 = vmul.f32 0.01, %v605_v47 }
 0x127   : > { %v631_v49 = vsel %vm627_vm14, %v605_v47, %v629_v48 }
 0x128   : > { %633 = vst [vmem:[%s434_s26] sm:$0xff] %v631_v49  ;;  %695 = vrot.lane.b32.xlu1 %v631_v49, %s1131_s27  ;;  %703 = vrot.lane.b32.xlu2 %v631_v49, %s1132_s28 }
 0x129   : > { %v624_v50 = vpop.f32.mrf.mxu1 }
 0x12a   : > { %v625_v51 = vadd.f32 %v624_v50, %v581_v45  ;;  %v790_v45 = vld [vmem:[%s1459_s6 + $0x18] sm:$0x3f] }
 0x12c   : > { %vm628_vm15 = vcmp.ge.f32.partialorder %v625_v51, 0.0  ;;  %v630_v52 = vmul.f32 0.01, %v625_v51 }
 0x12e   : > { %v632_v53 = vsel %vm628_vm15, %v625_v51, %v630_v52  ;;  %v789_v51 = vld [vmem:[%s1459_s6 + $0x10] sm:$0xff] }
 0x12f   : > { %634 = vst [vmem:[%s434_s26 + $0x8] sm:$0xff] %v632_v53  ;;  %705 = vrot.lane.b32.xlu0 %v632_v53, %s1132_s28 }
 0x130   : > { %687 = vrot.lane.b32.xlu1 %v632_v53, %s1133_s29  ;;  %697 = vrot.lane.b32.xlu2 %v632_v53, %s1131_s27 }
 0x137   : > { %685 = vrot.lane.b32.xlu0 %v631_v49, %s1133_s29 }
 0x138   : > { %665 = vrot.lane.b32.xlu1 %v631_v49, %s1135_s13  ;;  %675 = vrot.lane.b32.xlu2 %v631_v49, %s1134_s30 }
 0x13f   : > { %677 = vrot.lane.b32.xlu0 %v632_v53, %s1134_s30  ;;  %s448_s30 = scalar_lea.vmem %s1465_s12, %s1217_s23 }
 0x140   : > { %657 = vrot.lane.b32.xlu1 %v632_v53, %s1136_s14  ;;  %667 = vrot.lane.b32.xlu2 %v632_v53, %s1135_s13 }
 0x147   : > { %655 = vrot.lane.b32.xlu0 %v631_v49, %s1136_s14 }
 0x148   : > { %637 = vrot.lane.b32.xlu1 %v631_v49, %s1138_s16  ;;  %647 = vrot.lane.b32.xlu2 %v631_v49, %s1137_s15 }
 0x14f   : > { %649 = vrot.lane.b32.xlu0 %v632_v53, %s1137_s15  ;;  %s439_s15 = scalar_lea.vmem %s1463_s10, %s1217_s23 }
 0x150   : > { %639 = vrot.lane.b32.xlu2 %v632_v53, %s1138_s16  ;;  %s1049_s16 = sshll.u32 %s1477_s22, 3 }
 0x151   : > { %s443_s19 = scalar_lea.vmem %s1464_s11, %s1049_s16 }
 0x157   : > { %717 = vperm.xlu0 %1120, %v714_v0   ;;  %v845_v0 = vld [vmem:[%s1460_s7] sm:$0xff] }
 0x182   : > { %v704_v54 = vpop.permute.xlu2 %703 }
 0x18a   : > { %v698_v56 = vpop.permute.xlu2 %697 }
 0x192   : > { %v676_v62 = vpop.permute.xlu2 %675 }
 0x19a   : > { %v696_v55 = vpop.permute.xlu1 %695  ;;  %v668_v4 = vpop.permute.xlu2 %667 }
 0x19b   : > { %v699_v61 = vsel %vm560_vm3, %v696_v55, %v698_v56 }
 0x1a1   : > { %v706_v57 = vpop.permute.xlu0 %705 }
 0x1a2   : > { %v688_v58 = vpop.permute.xlu1 %687  ;;  %v707_v59 = vsel %vm569_vm0, %v704_v54, %v706_v57  ;;  %v710_v60 = vsel %vm569_vm0, %v706_v57, 0.0  ;;  %v648_v13 = vpop.permute.xlu2 %647 }
 0x1a3   : > { %1069 = vmatpush.msk.msra.mxu2 %vm1259_vm1, %v707_v59  ;;  %1078 = vmatpush.msk.msra.mxu3 %vm1263_vm2, %v710_v60  ;;  %v692_v63 = vsel %vm549_vm5, %v688_v58, 0.0 }
 0x1a5   : > { %731 = vmatpush.msra.mxu2 %v699_v61  ;;  %1079 = vmatpush.msk.msra.mxu3 %vm560_vm3, %v698_v56  ;;  %vm791_vm3 = vcmask 64512  }
 0x1a7   : > { %1080 = vmatpush.msk.msra.mxu3 %vm1278_vm6, %v692_v63 }
 0x1a9   : > { %v686_v1 = vpop.permute.xlu0 %685 }
 0x1aa   : > { %v666_v2 = vpop.permute.xlu1 %665  ;;  %v689_v3 = vsel %vm549_vm5, %v686_v1, %v688_v58  ;;  %v640_v12 = vpop.permute.xlu2 %639  ;;  %vm856_vm5 = vcmask 1045504  }
 0x1ab   : > { %1070 = vmatpush.msk.msra.mxu2 %vm1273_vm4, %v689_v3  ;;  %v672_v9 = vsel %vm527_vm8, 0.0, %v666_v2  ;;  %v669_v10 = vsel %vm527_vm8, %v666_v2, %v668_v4  ;;  %v846_v2 = vld [vmem:[%s1460_s7 + $0x8] sm:$0x3]  ;;  %v847_v3 = vld [vmem:[%s1461_s8] sm:$0xff] }
 0x1b1   : > { %v678_v5 = vpop.permute.xlu0 %677 }
 0x1b2   : > { %v658_v6 = vpop.permute.xlu1 %657  ;;  %v679_v7 = vsel %vm538_vm7, %v676_v62, %v678_v5  ;;  %v682_v8 = vsel %vm538_vm7, %v678_v5, 0.0 }
 0x1b3   : > { %1071 = vmatpush.msk.msra.mxu2 %vm1259_vm1, %v679_v7  ;;  %1081 = vmatpush.msk.msra.mxu3 %vm1263_vm2, %v682_v8 }
 0x1b5   : > { %734 = vmatpush.msra.mxu2 %v631_v49  ;;  %754 = vmatpush.msra.mxu3 %v632_v53  ;;  %v788_v49 = vld [vmem:[%s1459_s6 + $0x8] sm:$0xff]  ;;  %v787_v53 = vld [vmem:[%s1459_s6] sm:$0xff] }
 0x1b7   : > { %1072 = vmatpush.msk.msra.mxu2 %vm1273_vm4, %v672_v9  ;;  %1082 = vmatpush.msk.msra.mxu3 %vm1278_vm6, %v669_v10 }
 0x1b9   : > { %v656_v14 = vpop.permute.xlu0 %655 }
 0x1ba   : > { %v662_v15 = vsel %vm512_vm9, 0.0, %v656_v14  ;;  %v659_v16 = vsel %vm512_vm9, %v656_v14, %v658_v6  ;;  %v638_v17 = vpop.permute.xlu1 %637  ;;  %v848_v6 = vld [vmem:[%s1461_s8 + $0x8] sm:$0x3] }
 0x1bb   : > { %1073 = vmatpush.msk.msra.mxu2 %vm1259_vm1, %v662_v15  ;;  %1083 = vmatpush.msk.msra.mxu3 %vm1263_vm2, %v659_v16  ;;  %v644_v21 = vsel %vm488_vm11, 0.0, %v638_v17  ;;  %v641_v23 = vsel %vm488_vm11, %v638_v17, %v640_v12  ;;  %vm779_vm2 = vweird.f32 %v1122_v33  ;;  %vm884_vm11 = vcmask 1024  }
 0x1bc   : > { %v780_v38 = vsel %vm779_vm2, %v1122_v33, %v778_v37 }
 0x1bd   : > { %1075 = vmatpush.msk.msra.mxu2 %vm1313_vm12, %v648_v13 }
 0x1bf   : > { %1076 = vmatpush.msk.msra.mxu2 %vm1273_vm4, %v644_v21 }
 0x1c0   : > { %1077 = vmatmul.msk.f32.vlgmr.msra.gmra.mxu2 %vm583_vm13, %v713_v19 }
 0x1c1   : > { %v650_v11 = vpop.permute.xlu0 %649 }
 0x1c2   : > { %v651_v22 = vsel %vm503_vm10, %v648_v13, %v650_v11  ;;  %vm849_vm10 = vcmask 244736  }
 0x1c3   : > { %757 = vmatpush.msra.mxu3 %v651_v22 }
 0x1c5   : > { %1084 = vmatpush.msk.msra.mxu3 %vm1278_vm6, %v641_v23 }
 0x1c6   : > { %1085 = vmatmul.msk.f32.vlgmr.msra.gmra.mxu3 %vm583_vm13, %v713_v19 }
 0x1c9   : > { %v718_v24 = vpop.permute.xlu0 %717 }
 0x243   : > { %v740_v25 = vpop.f32.mrf.mxu2 }
 0x244   : > { %v741_v26 = vadd.f32 %v740_v25, %v718_v24 }
 0x246   : > { %v765_v27 = vmul.f32 0.01, %v741_v26  ;;  %vm763_vm0 = vcmp.ge.f32.partialorder %v741_v26, 0.0 }
 0x248   : > { %v767_v18 = vsel %vm763_vm0, %v741_v26, %v765_v27 }
 0x249   : > { %v760_v28 = vpop.f32.mrf.mxu3  ;;  %769 = vst [vmem:[%s439_s15] sm:$0xff] %v767_v18 }
 0x24a   : > { %v761_v29 = vadd.f32 %v760_v28, %v718_v24 }
 0x24c   : > { %v766_v30 = vmul.f32 0.01, %v761_v29  ;;  %vm764_vm1 = vcmp.ge.f32.partialorder %v761_v29, 0.0 }
 0x24e   : > { %v768_v20 = vsel %vm764_vm1, %v761_v29, %v766_v30 }
 0x24f   : > { %770 = vst [vmem:[%s439_s15 + $0x8] sm:$0xff] %v768_v20  ;;  %v771_v31 = vadd.f32 %v768_v20, %v767_v18 }
 0x251   : > { %772 = vadd.xlane.f32.xlu1 %v771_v31 }
 0x2c4   : > { %v773_v39 = vpop.xlane.xlu1 %772 }
 0x2c5   : > { %v781_v40 = vmul.f32 %v780_v38, %v773_v39 }
 0x2c7   : > { %782 = vst.msk [vmem:[%s443_s19] sm:$0xff] %vm527_vm8, %v781_v40  ;;  %819 = vmatpush.msrb.mxu0 %v781_v40  ;;  %1099 = vmatpush.msrb.mxu2 %v781_v40 }
 0x2c8   : > { %1100 = vmatpush.msrb.mxu3 %v781_v40  ;;  %1087 = vmatmul.msk.f32.vlgmr.msrb.gmra.mxu2 %vm791_vm3, %v784_v41 }
 0x2c9   : > { %1089 = vmatmul.msk.f32.vlgmr.msrb.gmra.mxu3 %vm791_vm3, %v786_v42  ;;  %1086 = vmatmul.msk.f32.vlgmr.msrb.gmra.mxu0 %vm791_vm3, %v783_v43 }
 0x2d0   : > { %1088 = vmatmul.msk.f32.gmra.mxu2 %vm791_vm3, %v785_v44 }
 0x346   : > { %v821_v54 = vpop.f32.mrf.mxu0 }
 0x347   : > { %v822_v58 = vadd.f32 %v821_v54, %v787_v53 }
 0x349   : > { %v837_v62 = vmul.f32 0.01, %v822_v58  ;;  %vm833_vm9 = vcmp.ge.f32.partialorder %v822_v58, 0.0 }
 0x34b   : > { %v824_v46 = vpop.f32.mrf.mxu2  ;;  %v841_v1 = vsel %vm833_vm9, %v822_v58, %v837_v62 }
 0x34c   : > { %v830_v47 = vpop.f32.mrf.mxu3  ;;  %v825_v55 = vadd.f32 %v824_v46, %v788_v49 }
 0x34d   : > { %v831_v48 = vadd.f32 %v830_v47, %v790_v45 }
 0x34e   : > { %v838_v60 = vmul.f32 0.01, %v825_v55  ;;  %vm834_vm7 = vcmp.ge.f32.partialorder %v825_v55, 0.0 }
 0x34f   : > { %v840_v50 = vmul.f32 0.01, %v831_v48  ;;  %vm836_vm4 = vcmp.ge.f32.partialorder %v831_v48, 0.0 }
 0x350   : > { %v842_v63 = vsel %vm834_vm7, %v825_v55, %v838_v60 }
 0x351   : > { %v844_v52 = vsel %vm836_vm4, %v831_v48, %v840_v50 }
 0x352   : > { %1090 = vmatpush.msk.msrb.mxu1 %vm856_vm5, %v844_v52 }
 0x353   : > { %v827_v56 = vpop.f32.mrf.mxu2 }
 0x354   : > { %v828_v57 = vadd.f32 %v827_v56, %v789_v51 }
 0x356   : > { %vm835_vm6 = vcmp.ge.f32.partialorder %v828_v57, 0.0  ;;  %v839_v59 = vmul.f32 0.01, %v828_v57 }
 0x358   : > { %v843_v61 = vsel %vm835_vm6, %v828_v57, %v839_v59 }
 0x359   : > { %873 = vmatpush.msrb.mxu1 %v843_v61 }
 0x35b   : > { %874 = vmatpush.msrb.mxu1 %v842_v63 }
 0x35d   : > { %875 = vmatpush.msrb.mxu1 %v841_v1 }
 0x35e   : > { %1091 = vmatmul.msk.f32.vlgmr.msrb.gmra.mxu1 %vm849_vm10, %v845_v0 }
 0x366   : > { %1092 = vmatmul.msk.f32.gmra.mxu1 %vm849_vm10, %v846_v2 }
 0x3db   : > { %v877_v4 = vpop.f32.mrf.mxu1 }
 0x3dc   : > { %v878_v5 = vadd.f32 %v877_v4, %v847_v3 }
 0x3de   : > { %883 = vst.msk [vmem:[%s448_s30] sm:$0xff] %vm527_vm8, %v878_v5 }
 0x3e3   : > { %v880_v7 = vpop.f32.mrf.mxu1 }
 0x3e4   : > { %v881_v8 = vadd.f32 %v880_v7, %v848_v6 }
 0x3e6   : > { %885 = vst.msk [vmem:[%s448_s30 + $0x8] sm:$0x3] %vm884_vm11, %v881_v8 }
 0x3e7 PF: > { %s23_s21 = sadd.s32 1, %s1129_s21  }
 0x3e8   : > { %p20_p4 = scmp.ge.s32.totalorder %s23_s21, 4  }
 0x3ea   :  { %22 = sbr.rel (!%p20_p4) target bundleno = 1 (0x1), region = 122 }

</bundles_post_ra>
